<compile_context>
chip_gen: v5e
topology: v5e:2x2
jax: 0.10.0
libtpu: 0.0.40
codegen_flags: <defaults>
</compile_context>

<pallas_src>
import functools

import jax
import jax.numpy as jnp
from jax.experimental import pallas as pl
from jax.experimental.pallas import tpu as pltpu


# --------------------------------------------------------------------------- #
# Kernel
# --------------------------------------------------------------------------- #
def _value_net_kernel(x_ref, w1_ref, b1_ref, w2_ref, b2_ref, w3_ref, b3_ref, o_ref,
                      *, mm_dtype, ep_dtype, mxu_head):
    # Layer 1: Linear(state_dim -> hidden) + ReLU.
    # Cast the f32 input block to the matmul dtype in-kernel (hidden under the MXU).
    x = x_ref[...].astype(mm_dtype)
    h1 = jnp.dot(x, w1_ref[...], preferred_element_type=jnp.float32)
    h1 = jnp.maximum(h1.astype(ep_dtype) + b1_ref[...], 0).astype(mm_dtype)

    # Layer 2: Linear(hidden -> hidden) + ReLU (epilogue in ep_dtype: bf16 on v6e/v7x).
    h2 = jnp.dot(h1, w2_ref[...], preferred_element_type=jnp.float32)
    h2 = jnp.maximum(h2.astype(ep_dtype) + b2_ref[...], 0)

    # Layer 3: Linear(hidden -> 1).
    if mxu_head:
        # v6e/v7x: the MXU has slack (an N=1 matmul costs the same pushes as N=128),
        # while the VPU/XLU are near-critical -> run the reduction on the MXU.
        out = jnp.dot(h2.astype(mm_dtype), w3_ref[...],
                      preferred_element_type=jnp.float32) + b3_ref[...]
    else:
        # v5e: MXU-bound -> keep the VPU broadcast-multiply + XLU cross-lane reduce.
        out = jnp.sum(h2.astype(jnp.float32) * w3_ref[...],
                      axis=-1, keepdims=True) + b3_ref[...]

    # NOTE: a lane-dense (tb//128, 128) output pack would cut the masked column
    # stores ~128x, but requires a sublane->lane relayout Mosaic reshape does not
    # reliably support; kept as a (tb, 1) store.
    o_ref[...] = out.astype(o_ref.dtype)


# --------------------------------------------------------------------------- #
# Generation / VMEM sizing helpers
# --------------------------------------------------------------------------- #
def _round_up(x, m):
    return ((x + m - 1) // m) * m


def _tpu_generation():
    """Best-effort TPU generation (5, 6, 7, ...). Defaults to 6 (modern) if unknown."""
    try:
        import re
        kind = jax.devices()[0].device_kind  # e.g. "TPU v5e", "TPU v6e", "TPU7x"
        m = re.search(r"(\d+)", kind)
        if m:
            return int(m.group(1))
    except Exception:
        pass
    return 6


def _vmem_capacity_bytes(gen):
    cap = None
    try:
        cap = int(pltpu.get_tpu_info().vmem_capacity_bytes)
    except Exception:
        cap = None
    if cap is None or cap <= 0:
        cap = (64 << 20) if gen >= 7 else (128 << 20)
    if gen >= 7:
        # Guard against the query reporting the 128 MiB chip total instead of the
        # 64 MiB per-TensorCore VMEM on v7x.
        cap = min(cap, 64 << 20)
    return cap


def _vmem_limit_bytes(vmem_cap):
    return int(min(vmem_cap * 0.85, 100 << 20))


def _choose_batch_tile(batch, state_dim, hidden, gen, vmem_cap):
    f32, bf16 = 4, 2
    # Resident operands (worst case: double-buffered if pl.Buffered(1) is unavailable).
    weight_bytes = 2 * (state_dim * hidden * bf16      # w1
                        + hidden * hidden * bf16       # w2
                        + hidden * f32                 # w3 (either layout)
                        + 2 * hidden * f32 + 512)      # biases (+ lane padding slack)
    budget = int(vmem_cap * 0.7) - weight_bytes
    budget = max(budget, 2 << 20)
    # Per-row VMEM: double-buffered x block + double-buffered (lane-padded) out block
    # + live activations (h1/h2 in bf16 plus one f32 accumulator's worth of headroom).
    per_row = (2 * state_dim * f32
               + 2 * 128 * f32
               + hidden * (2 * bf16 + 2 * f32))
    cap = budget // per_row
    cap = max(128, min(32768, (cap // 128) * 128))
    if gen >= 7 and batch > 256:
        # Two TensorCores on v7x: guarantee >= 2 grid tiles so "parallel" can shard.
        cap = min(cap, max(128, _round_up(pl.cdiv(batch, 2), 128)))
    tb = min(cap, _round_up(batch, 8))
    return max(tb, 8)


# --------------------------------------------------------------------------- #
# Wrapper
# --------------------------------------------------------------------------- #
def value_net_forward(state, params, *, tb=None, precision="bf16"):
    """state: (B, state_dim) float32.  Returns (B, 1) float32.

    precision="bf16": bf16 MXU operands with f32 accumulation (fast path).
    precision="f32":  full-f32 math, matches the PyTorch module's numerics closely.
    """
    assert precision in ("bf16", "f32")
    w1, b1, w2, b2, w3, b3 = params
    batch, state_dim = state.shape
    hidden = w1.shape[1]

    gen = _tpu_generation()
    vmem_cap = _vmem_capacity_bytes(gen)
    mm_dtype = jnp.bfloat16 if precision == "bf16" else jnp.float32
    ep_dtype = jnp.bfloat16 if (precision == "bf16" and gen >= 6) else jnp.float32
    mxu_head = gen >= 6   # v5e keeps the VPU/XLU final layer

    if tb is None:
        tb = _choose_batch_tile(batch, state_dim, hidden, gen, vmem_cap)
    else:
        tb = max(8, _round_up(int(tb), 8))
    num_tiles = pl.cdiv(batch, tb)   # ragged batches -> Pallas pads/masks the last block

    # Resident operands (weights/biases); `state` itself is NOT touched here.
    w1c = w1.astype(mm_dtype)
    w2c = w2.astype(mm_dtype)
    b1c = b1.reshape(1, hidden).astype(ep_dtype)
    b2c = b2.reshape(1, hidden).astype(ep_dtype)
    if mxu_head:
        w3c = w3.reshape(hidden, 1).astype(mm_dtype)
        w3_shape = (hidden, 1)
    else:
        w3c = w3.reshape(1, hidden).astype(jnp.float32)
        w3_shape = (1, hidden)
    b3c = b3.reshape(1, 1).astype(jnp.float32)

    kernel = functools.partial(_value_net_kernel, mm_dtype=mm_dtype,
                               ep_dtype=ep_dtype, mxu_head=mxu_head)

    def build(single_buffer_weights):
        if single_buffer_weights:
            # Constant index_map -> DMA'd once; single buffer halves resident VMEM.
            resident = lambda shp: pl.BlockSpec(shp, lambda i: (0, 0),
                                                pipeline_mode=pl.Buffered(1))
        else:
            resident = lambda shp: pl.BlockSpec(shp, lambda i: (0, 0))
        return pl.pallas_call(
            kernel,
            out_shape=jax.ShapeDtypeStruct((batch, 1), jnp.float32),
            grid_spec=pltpu.PrefetchScalarGridSpec(
                num_scalar_prefetch=0,
                grid=(num_tiles,),
                in_specs=[
                    pl.BlockSpec((tb, state_dim), lambda i: (i, 0)),   # state tile (f32)
                    resident((state_dim, hidden)),                     # w1
                    resident((1, hidden)),                             # b1
                    resident((hidden, hidden)),                        # w2
                    resident((1, hidden)),                             # b2
                    resident(w3_shape),                                # w3
                    resident((1, 1)),                                  # b3
                ],
                out_specs=pl.BlockSpec((tb, 1), lambda i: (i, 0)),
            ),
            compiler_params=pltpu.CompilerParams(
                dimension_semantics=("parallel",),
                vmem_limit_bytes=_vmem_limit_bytes(vmem_cap),
            ),
        )

    args = (state, w1c, b1c, w2c, b2c, w3c, b3c)
    try:
        return build(True)(*args)
    except Exception:
        # pl.Buffered(1) not supported on this jax/libtpu -> default double-buffering.
        return build(False)(*args)


# --------------------------------------------------------------------------- #
# Params / reference
# --------------------------------------------------------------------------- #
def init_value_net_params(key, state_dim, hidden_dim=256):
    """PyTorch nn.Linear default init U(-1/sqrt(fan_in), +), weights stored as (in, out)."""
    ks = jax.random.split(key, 6)

    def linear(kw, kb, fan_in, fan_out):
        bound = 1.0 / (fan_in ** 0.5)
        w = jax.random.uniform(kw, (fan_in, fan_out), jnp.float32, -bound, bound)
        b = jax.random.uniform(kb, (1, fan_out), jnp.float32, -bound, bound)
        return w, b

    w1, b1 = linear(ks[0], ks[1], state_dim, hidden_dim)
    w2, b2 = linear(ks[2], ks[3], hidden_dim, hidden_dim)
    w3, b3 = linear(ks[4], ks[5], hidden_dim, 1)
    return (w1, b1, w2, b2, w3, b3)


def value_net_ref(state, params, *, precision="bf16"):
    """Pure-JAX reference mirroring the kernel's dtype strategy for the current chip."""
    w1, b1, w2, b2, w3, b3 = params
    hidden = w1.shape[1]
    gen = _tpu_generation()
    mm = jnp.bfloat16 if precision == "bf16" else jnp.float32
    ep = jnp.bfloat16 if (precision == "bf16" and gen >= 6) else jnp.float32

    h = jnp.dot(state.astype(mm), w1.astype(mm), preferred_element_type=jnp.float32)
    h = jnp.maximum(h.astype(ep) + b1.reshape(1, hidden).astype(ep), 0).astype(mm)
    h = jnp.dot(h, w2.astype(mm), preferred_element_type=jnp.float32)
    h = jnp.maximum(h.astype(ep) + b2.reshape(1, hidden).astype(ep), 0)
    if gen >= 6:
        out = jnp.dot(h.astype(mm), w3.reshape(hidden, 1).astype(mm),
                      preferred_element_type=jnp.float32)
    else:
        out = jnp.sum(h.astype(jnp.float32) * w3.reshape(1, hidden),
                      axis=-1, keepdims=True)
    return out + b3.reshape(1, 1)


# --------------------------------------------------------------------------- #
# Self-test
# --------------------------------------------------------------------------- #
if __name__ == "__main__":
    key = jax.random.PRNGKey(0)
    k_param, k_s1, k_s2 = jax.random.split(key, 3)

    state_dim, hidden_dim = 16, 32
    params = init_value_net_params(k_param, state_dim, hidden_dim)

    # Case 1: small batch, single block, auto tile size (bf16 fast path).
    s1 = jax.random.normal(k_s1, (8, state_dim), jnp.float32)
    o1 = jax.block_until_ready(value_net_forward(s1, params))
    r1 = value_net_ref(s1, params)
    assert o1.shape == (8, 1), o1.shape
    assert jnp.allclose(o1, r1, atol=2e-3, rtol=2e-3), (o1, r1)

    # Case 2: ragged batch (300 rows, tb=128) -> multi-tile grid + partial last block,
    # exercising the no-pad / no-pre-pass input path.
    s2 = jax.random.normal(k_s2, (300, state_dim), jnp.float32)
    o2 = jax.block_until_ready(value_net_forward(s2, params, tb=128))
    r2 = value_net_ref(s2, params)
    assert o2.shape == (300, 1), o2.shape
    assert jnp.allclose(o2, r2, atol=2e-3, rtol=2e-3), (o2, r2)

    # Case 3: full-f32 precision mode (closely matches the f32 PyTorch ValueNet).
    o3 = jax.block_until_ready(value_net_forward(s1, params, precision="f32"))
    r3 = value_net_ref(s1, params, precision="f32")
    assert o3.shape == (8, 1), o3.shape
    assert jnp.allclose(o3, r3, atol=2e-3, rtol=2e-3), (o3, r3)

    print("KERNEL_OK")
</pallas_src>

<mosaic_0001>
module attributes {stable_mosaic.version = 11 : i64} {
  func.func @_value_net_kernel(%arg0: i32, %arg1: memref<8x16xf32, #tpu.memory_space<vmem>>, %arg2: memref<16x32xbf16, #tpu.memory_space<vmem>>, %arg3: memref<1x32xbf16, #tpu.memory_space<vmem>>, %arg4: memref<32x32xbf16, #tpu.memory_space<vmem>>, %arg5: memref<1x32xbf16, #tpu.memory_space<vmem>>, %arg6: memref<32x1xbf16, #tpu.memory_space<vmem>>, %arg7: memref<1x1xf32, #tpu.memory_space<vmem>>, %arg8: memref<8x1xf32, #tpu.memory_space<vmem>>) attributes {dimension_semantics = [#tpu.dimension_semantics<parallel>], iteration_bounds = array<i64: 1>, scalar_prefetch = 0 : i64, scratch_operands = 0 : i64, tpu.core_type = #tpu.core_type<tc>, window_params = [{transform_indices = @transform_0, window_bounds = array<i64: 8, 16>}, {pipeline_mode = #tpu.pipeline_mode<synchronous>, transform_indices = @transform_1, window_bounds = array<i64: 16, 32>}, {pipeline_mode = #tpu.pipeline_mode<synchronous>, transform_indices = @transform_2, window_bounds = array<i64: 1, 32>}, {pipeline_mode = #tpu.pipeline_mode<synchronous>, transform_indices = @transform_3, window_bounds = array<i64: 32, 32>}, {pipeline_mode = #tpu.pipeline_mode<synchronous>, transform_indices = @transform_4, window_bounds = array<i64: 1, 32>}, {pipeline_mode = #tpu.pipeline_mode<synchronous>, transform_indices = @transform_5, window_bounds = array<i64: 32, 1>}, {pipeline_mode = #tpu.pipeline_mode<synchronous>, transform_indices = @transform_6, window_bounds = array<i64: 1, 1>}, {transform_indices = @transform_7, window_bounds = array<i64: 8, 1>}]} {
    %c0 = arith.constant 0 : index
    %c0_0 = arith.constant 0 : index
    %0 = vector.load %arg1[%c0, %c0_0] : memref<8x16xf32, #tpu.memory_space<vmem>>, vector<8x16xf32>
    %1 = arith.truncf %0 : vector<8x16xf32> to vector<8x16xbf16>
    %c0_1 = arith.constant 0 : index
    %c0_2 = arith.constant 0 : index
    %2 = vector.load %arg2[%c0_1, %c0_2] : memref<16x32xbf16, #tpu.memory_space<vmem>>, vector<16x32xbf16>
    %cst = arith.constant dense<0.000000e+00> : vector<8x32xf32>
    %3 = tpu.matmul %1, %2, %cst {dimension_numbers = #tpu.dot_dimension_numbers<[1], [0], [0], [1], [0, 0, 1, 1], [], []>} : vector<8x16xbf16>, vector<16x32xbf16>, vector<8x32xf32> -> vector<8x32xf32>
    %4 = arith.truncf %3 : vector<8x32xf32> to vector<8x32xbf16>
    %c0_3 = arith.constant 0 : index
    %c0_4 = arith.constant 0 : index
    %5 = vector.load %arg3[%c0_3, %c0_4] : memref<1x32xbf16, #tpu.memory_space<vmem>>, vector<1x32xbf16>
    %6 = vector.broadcast %5 : vector<1x32xbf16> to vector<8x32xbf16>
    %7 = arith.addf %4, %6 : vector<8x32xbf16>
    %cst_5 = arith.constant 0.000000e+00 : bf16
    %8 = vector.broadcast %cst_5 : bf16 to vector<8x32xbf16>
    %9 = arith.maximumf %7, %8 : vector<8x32xbf16>
    %c0_6 = arith.constant 0 : index
    %c0_7 = arith.constant 0 : index
    %10 = vector.load %arg4[%c0_6, %c0_7] : memref<32x32xbf16, #tpu.memory_space<vmem>>, vector<32x32xbf16>
    %cst_8 = arith.constant dense<0.000000e+00> : vector<8x32xf32>
    %11 = tpu.matmul %9, %10, %cst_8 {dimension_numbers = #tpu.dot_dimension_numbers<[1], [0], [0], [1], [0, 0, 1, 1], [], []>} : vector<8x32xbf16>, vector<32x32xbf16>, vector<8x32xf32> -> vector<8x32xf32>
    %12 = arith.truncf %11 : vector<8x32xf32> to vector<8x32xbf16>
    %c0_9 = arith.constant 0 : index
    %c0_10 = arith.constant 0 : index
    %13 = vector.load %arg5[%c0_9, %c0_10] : memref<1x32xbf16, #tpu.memory_space<vmem>>, vector<1x32xbf16>
    %14 = vector.broadcast %13 : vector<1x32xbf16> to vector<8x32xbf16>
    %15 = arith.addf %12, %14 : vector<8x32xbf16>
    %cst_11 = arith.constant 0.000000e+00 : bf16
    %16 = vector.broadcast %cst_11 : bf16 to vector<8x32xbf16>
    %17 = arith.maximumf %15, %16 : vector<8x32xbf16>
    %c0_12 = arith.constant 0 : index
    %c0_13 = arith.constant 0 : index
    %18 = vector.load %arg6[%c0_12, %c0_13] : memref<32x1xbf16, #tpu.memory_space<vmem>>, vector<32x1xbf16>
    %cst_14 = arith.constant dense<0.000000e+00> : vector<8x1xf32>
    %19 = tpu.matmul %17, %18, %cst_14 {dimension_numbers = #tpu.dot_dimension_numbers<[1], [0], [0], [1], [0, 0, 1, 1], [], []>} : vector<8x32xbf16>, vector<32x1xbf16>, vector<8x1xf32> -> vector<8x1xf32>
    %c0_15 = arith.constant 0 : index
    %c0_16 = arith.constant 0 : index
    %20 = vector.load %arg7[%c0_15, %c0_16] : memref<1x1xf32, #tpu.memory_space<vmem>>, vector<1x1xf32>
    %21 = vector.broadcast %20 : vector<1x1xf32> to vector<8x1xf32>
    %22 = arith.addf %19, %21 : vector<8x1xf32>
    %c0_17 = arith.constant 0 : index
    %c0_18 = arith.constant 0 : index
    %23 = vector.load %arg8[%c0_17, %c0_18] : memref<8x1xf32, #tpu.memory_space<vmem>>, vector<8x1xf32>
    tpu.vector_store %arg8[%c0_17, %c0_18], %22 {strides = array<i32>} : memref<8x1xf32, #tpu.memory_space<vmem>>, vector<8x1xf32>,
    return
  }
  func.func @transform_0(%arg0: i32) -> (i32, i32) {
    %c0_i32 = arith.constant 0 : i32
    %c0_i32_0 = arith.constant 0 : i32
    return %arg0, %c0_i32 : i32, i32
  }
  func.func @transform_1(%arg0: i32) -> (i32, i32) {
    %c0_i32 = arith.constant 0 : i32
    %c0_i32_0 = arith.constant 0 : i32
    %c0_i32_1 = arith.constant 0 : i32
    return %c0_i32, %c0_i32_0 : i32, i32
  }
  func.func @transform_2(%arg0: i32) -> (i32, i32) {
    %c0_i32 = arith.constant 0 : i32
    %c0_i32_0 = arith.constant 0 : i32
    %c0_i32_1 = arith.constant 0 : i32
    return %c0_i32, %c0_i32_0 : i32, i32
  }
  func.func @transform_3(%arg0: i32) -> (i32, i32) {
    %c0_i32 = arith.constant 0 : i32
    %c0_i32_0 = arith.constant 0 : i32
    %c0_i32_1 = arith.constant 0 : i32
    return %c0_i32, %c0_i32_0 : i32, i32
  }
  func.func @transform_4(%arg0: i32) -> (i32, i32) {
    %c0_i32 = arith.constant 0 : i32
    %c0_i32_0 = arith.constant 0 : i32
    %c0_i32_1 = arith.constant 0 : i32
    return %c0_i32, %c0_i32_0 : i32, i32
  }
  func.func @transform_5(%arg0: i32) -> (i32, i32) {
    %c0_i32 = arith.constant 0 : i32
    %c0_i32_0 = arith.constant 0 : i32
    %c0_i32_1 = arith.constant 0 : i32
    return %c0_i32, %c0_i32_0 : i32, i32
  }
  func.func @transform_6(%arg0: i32) -> (i32, i32) {
    %c0_i32 = arith.constant 0 : i32
    %c0_i32_0 = arith.constant 0 : i32
    %c0_i32_1 = arith.constant 0 : i32
    return %c0_i32, %c0_i32_0 : i32, i32
  }
  func.func @transform_7(%arg0: i32) -> (i32, i32) {
    %c0_i32 = arith.constant 0 : i32
    %c0_i32_0 = arith.constant 0 : i32
    return %arg0, %c0_i32 : i32, i32
  }
}

module attributes {stable_mosaic.version = 11 : i64} {
  func.func @_value_net_kernel(%arg0: i32, %arg1: memref<8x16xf32, #tpu.memory_space<vmem>>, %arg2: memref<16x32xbf16, #tpu.memory_space<vmem>>, %arg3: memref<1x32xbf16, #tpu.memory_space<vmem>>, %arg4: memref<32x32xbf16, #tpu.memory_space<vmem>>, %arg5: memref<1x32xbf16, #tpu.memory_space<vmem>>, %arg6: memref<32x1xbf16, #tpu.memory_space<vmem>>, %arg7: memref<1x1xf32, #tpu.memory_space<vmem>>, %arg8: memref<8x1xf32, #tpu.memory_space<vmem>>) attributes {dimension_semantics = [#tpu.dimension_semantics<parallel>], iteration_bounds = array<i64: 1>, scalar_prefetch = 0 : i64, scratch_operands = 0 : i64, tpu.core_type = #tpu.core_type<tc>, window_params = [{transform_indices = @transform_0, window_bounds = array<i64: 8, 16>}, {pipeline_mode = #tpu.pipeline_mode<synchronous>, transform_indices = @transform_1, window_bounds = array<i64: 16, 32>}, {pipeline_mode = #tpu.pipeline_mode<synchronous>, transform_indices = @transform_2, window_bounds = array<i64: 1, 32>}, {pipeline_mode = #tpu.pipeline_mode<synchronous>, transform_indices = @transform_3, window_bounds = array<i64: 32, 32>}, {pipeline_mode = #tpu.pipeline_mode<synchronous>, transform_indices = @transform_4, window_bounds = array<i64: 1, 32>}, {pipeline_mode = #tpu.pipeline_mode<synchronous>, transform_indices = @transform_5, window_bounds = array<i64: 32, 1>}, {pipeline_mode = #tpu.pipeline_mode<synchronous>, transform_indices = @transform_6, window_bounds = array<i64: 1, 1>}, {transform_indices = @transform_7, window_bounds = array<i64: 8, 1>}]} {
    %c0 = arith.constant 0 : index
    %c0_0 = arith.constant 0 : index
    %0 = vector.load %arg1[%c0, %c0_0] : memref<8x16xf32, #tpu.memory_space<vmem>>, vector<8x16xf32>
    %1 = arith.truncf %0 : vector<8x16xf32> to vector<8x16xbf16>
    %c0_1 = arith.constant 0 : index
    %c0_2 = arith.constant 0 : index
    %2 = vector.load %arg2[%c0_1, %c0_2] : memref<16x32xbf16, #tpu.memory_space<vmem>>, vector<16x32xbf16>
    %cst = arith.constant dense<0.000000e+00> : vector<8x32xf32>
    %3 = tpu.matmul %1, %2, %cst {dimension_numbers = #tpu.dot_dimension_numbers<[1], [0], [0], [1], [0, 0, 1, 1], [], []>} : vector<8x16xbf16>, vector<16x32xbf16>, vector<8x32xf32> -> vector<8x32xf32>
    %4 = arith.truncf %3 : vector<8x32xf32> to vector<8x32xbf16>
    %c0_3 = arith.constant 0 : index
    %c0_4 = arith.constant 0 : index
    %5 = vector.load %arg3[%c0_3, %c0_4] : memref<1x32xbf16, #tpu.memory_space<vmem>>, vector<1x32xbf16>
    %6 = vector.broadcast %5 : vector<1x32xbf16> to vector<8x32xbf16>
    %7 = arith.addf %4, %6 : vector<8x32xbf16>
    %cst_5 = arith.constant 0.000000e+00 : bf16
    %8 = vector.broadcast %cst_5 : bf16 to vector<8x32xbf16>
    %9 = arith.maximumf %7, %8 : vector<8x32xbf16>
    %c0_6 = arith.constant 0 : index
    %c0_7 = arith.constant 0 : index
    %10 = vector.load %arg4[%c0_6, %c0_7] : memref<32x32xbf16, #tpu.memory_space<vmem>>, vector<32x32xbf16>
    %cst_8 = arith.constant dense<0.000000e+00> : vector<8x32xf32>
    %11 = tpu.matmul %9, %10, %cst_8 {dimension_numbers = #tpu.dot_dimension_numbers<[1], [0], [0], [1], [0, 0, 1, 1], [], []>} : vector<8x32xbf16>, vector<32x32xbf16>, vector<8x32xf32> -> vector<8x32xf32>
    %12 = arith.truncf %11 : vector<8x32xf32> to vector<8x32xbf16>
    %c0_9 = arith.constant 0 : index
    %c0_10 = arith.constant 0 : index
    %13 = vector.load %arg5[%c0_9, %c0_10] : memref<1x32xbf16, #tpu.memory_space<vmem>>, vector<1x32xbf16>
    %14 = vector.broadcast %13 : vector<1x32xbf16> to vector<8x32xbf16>
    %15 = arith.addf %12, %14 : vector<8x32xbf16>
    %cst_11 = arith.constant 0.000000e+00 : bf16
    %16 = vector.broadcast %cst_11 : bf16 to vector<8x32xbf16>
    %17 = arith.maximumf %15, %16 : vector<8x32xbf16>
    %c0_12 = arith.constant 0 : index
    %c0_13 = arith.constant 0 : index
    %18 = vector.load %arg6[%c0_12, %c0_13] : memref<32x1xbf16, #tpu.memory_space<vmem>>, vector<32x1xbf16>
    %cst_14 = arith.constant dense<0.000000e+00> : vector<8x1xf32>
    %19 = tpu.matmul %17, %18, %cst_14 {dimension_numbers = #tpu.dot_dimension_numbers<[1], [0], [0], [1], [0, 0, 1, 1], [], []>} : vector<8x32xbf16>, vector<32x1xbf16>, vector<8x1xf32> -> vector<8x1xf32>
    %c0_15 = arith.constant 0 : index
    %c0_16 = arith.constant 0 : index
    %20 = vector.load %arg7[%c0_15, %c0_16] : memref<1x1xf32, #tpu.memory_space<vmem>>, vector<1x1xf32>
    %21 = vector.broadcast %20 : vector<1x1xf32> to vector<8x1xf32>
    %22 = arith.addf %19, %21 : vector<8x1xf32>
    %c0_17 = arith.constant 0 : index
    %c0_18 = arith.constant 0 : index
    %23 = vector.load %arg8[%c0_17, %c0_18] : memref<8x1xf32, #tpu.memory_space<vmem>>, vector<8x1xf32>
    tpu.vector_store %arg8[%c0_17, %c0_18], %22 {strides = array<i32>} : memref<8x1xf32, #tpu.memory_space<vmem>>, vector<8x1xf32>,
    return
  }
  func.func @transform_0(%arg0: i32) -> (i32, i32) {
    %c0_i32 = arith.constant 0 : i32
    %c0_i32_0 = arith.constant 0 : i32
    return %arg0, %c0_i32 : i32, i32
  }
  func.func @transform_1(%arg0: i32) -> (i32, i32) {
    %c0_i32 = arith.constant 0 : i32
    %c0_i32_0 = arith.constant 0 : i32
    %c0_i32_1 = arith.constant 0 : i32
    return %c0_i32, %c0_i32_0 : i32, i32
  }
  func.func @transform_2(%arg0: i32) -> (i32, i32) {
    %c0_i32 = arith.constant 0 : i32
    %c0_i32_0 = arith.constant 0 : i32
    %c0_i32_1 = arith.constant 0 : i32
    return %c0_i32, %c0_i32_0 : i32, i32
  }
  func.func @transform_3(%arg0: i32) -> (i32, i32) {
    %c0_i32 = arith.constant 0 : i32
    %c0_i32_0 = arith.constant 0 : i32
    %c0_i32_1 = arith.constant 0 : i32
    return %c0_i32, %c0_i32_0 : i32, i32
  }
  func.func @transform_4(%arg0: i32) -> (i32, i32) {
    %c0_i32 = arith.constant 0 : i32
    %c0_i32_0 = arith.constant 0 : i32
    %c0_i32_1 = arith.constant 0 : i32
    return %c0_i32, %c0_i32_0 : i32, i32
  }
  func.func @transform_5(%arg0: i32) -> (i32, i32) {
    %c0_i32 = arith.constant 0 : i32
    %c0_i32_0 = arith.constant 0 : i32
    %c0_i32_1 = arith.constant 0 : i32
    return %c0_i32, %c0_i32_0 : i32, i32
  }
  func.func @transform_6(%arg0: i32) -> (i32, i32) {
    %c0_i32 = arith.constant 0 : i32
    %c0_i32_0 = arith.constant 0 : i32
    %c0_i32_1 = arith.constant 0 : i32
    return %c0_i32, %c0_i32_0 : i32, i32
  }
  func.func @transform_7(%arg0: i32) -> (i32, i32) {
    %c0_i32 = arith.constant 0 : i32
    %c0_i32_0 = arith.constant 0 : i32
    return %arg0, %c0_i32 : i32, i32
  }
}

</mosaic_0001>

<bundles_post_ra>
// kernel: tpu_custom_call.1
= control target key start
LH: loop header
LB: loop body
LE: loop exit
PB: predicated region body
PF: predicated region fallthrough
CT: control target
= control target key end

     0   :  { %s350_s0 = inlined_call_operand.hbm [shape: f32[8,16], index: 0, kind: input, shape index: {}]   ;;  %s351_s1 = inlined_call_operand.hbm [shape: bf16[16,32], index: 1, kind: input, shape index: {}]   ;;  %s352_s2 = inlined_call_operand.vmem [shape: bf16[1,32], index: 2, kind: input, shape index: {}]   ;;  %s353_s3 = inlined_call_operand.vmem [shape: bf16[32,32], index: 3, kind: input, shape index: {}]   ;;  %s354_s4 = inlined_call_operand.vmem [shape: bf16[1,32], index: 4, kind: input, shape index: {}]   ;;  %s355_s5 = inlined_call_operand.vmem [shape: bf16[32,1], index: 5, kind: input, shape index: {}]   ;;  %s356_s6 = inlined_call_operand.<no memory space> [shape: f32[1,1], index: 6, kind: input, shape index: {}]   ;;  %s357_s7 = inlined_call_operand.vmem [shape: f32[8,1], index: 7, kind: output, shape index: {}]  }
   0x1   :  { %v12_v0 = vstv %s356_s6 }
   0x2   :  { %13 = vst [vmem:[#allocation2] sm:$0x1] %v12_v0 }
   0x3   :  { %14 = vsyncpa [#allocation4], 0  ;;  %s21_s28 = sshll.u32 %s350_s0, 4  ;;  %s22_s28 = int_to_ptr.hbm [resolvable:$true] %s21_s28 }
   0x4   :  { %15 = vsyncpa [#allocation6], 0  ;;  %s274_s29 = smov [#allocation3]   ;;  %s31_s10 = sshll.u32 %s351_s1, 4  ;;  %s32_s10 = int_to_ptr.hbm [resolvable:$true] %s31_s10 }
   0x5   :  { %s23_s30 = sshll.u32 %s274_s29, 4  ;;  %s275_s11 = smov [#allocation5]   ;;  %s24_s30 = int_to_ptr.vmem [resolvable:$true] %s23_s30 }
   0x6   :  { %26 = dma.hbm_to_vmem [thread:$0]  %s22_s28, 128, %s24_s30, [#allocation4]  }
   0x7   :  { %s33_s12 = sshll.u32 %s275_s11, 4  ;;  %s276_s6 = smov 64   ;;  %s34_s12 = int_to_ptr.vmem [resolvable:$true] %s33_s12 }
   0x8   :  { %s277_s13 = smov 4  }
   0x9   :  { %39 = dma.hbm_to_vmem [thread:$0]  %s32_s10, 128, %s34_s12, [#allocation6], %s276_s6, %s276_s6, %s277_s13  }
   0xa   :  { %270 = dma.done.wait [#allocation4], 128  }
   0xb   :  { %271 = vsyncadd [#allocation4], 4294967168 }
   0xc   :  { %272 = dma.done.wait [#allocation6], 128  }
   0xd   :  { %273 = vsyncadd [#allocation6], 4294967168  ;;  %v212_v1 = vld [vmem:[#allocation5] sm:$0xff]  ;;  %v59_v2 = vld [vmem:[#allocation3] sm:$0xff]  ;;  %vm69_vm0 = vcmask 130048   ;;  %vm115_vm1 = vcmask 261120  }
   0xe   :  { %v60_v3 = vpack.c.bf16 %v59_v2, %v59_v2  ;;  %80 = vmatpush.bf16.msra.mxu0 %v212_v1  ;;  %v214_v4 = vld [vmem:[%s353_s3 + $0x8] sm:$0xff]  ;;  %v213_v5 = vld [vmem:[%s353_s3] sm:$0xff]  ;;  %vm181_vm2 = vcmask 7168  }
   0xf   :  { %125 = vmatpush.bf16.msra.mxu1 %v214_v4  ;;  %v87_v6 = vld [vmem:[%s352_s2] sm:$0x1]  ;;  %v216_v17 = vld [vmem:[%s355_s5 + $0x8] sm:$0xff] }
  0x10   :  { %v89_v7 = vpack.i.b16 %v87_v6, %v87_v6  ;;  %174 = vmatpush.bf16.msra.mxu2 %v216_v17  ;;  %v215_v18 = vld [vmem:[%s355_s5] sm:$0xff] }
  0x11   :  { %193 = vmatmul.msk.bf16.vlgmr.msra.gmra.mxu0 %vm69_vm0, %v60_v3  ;;  %v133_v19 = vld [vmem:[%s354_s4] sm:$0x1] }
  0x12   :  { %v91_v8 = vperm.slane %v89_v7, 0  ;;  %v135_v20 = vpack.i.b16 %v133_v19, %v133_v19  ;;  %v221_v30 = vld [vmem:[#allocation2] ss:$0 sm:$0xff] }
  0x13   :  { %126 = vmatpush.bf16.msra.mxu1 %v213_v5 }
  0x14   :  { %v93_v11 = vunpack.c.l.bf16 %v91_v8  ;;  %175 = vmatpush.bf16.msra.mxu2 %v215_v18  ;;  %v137_v21 = vperm.slane %v135_v20, 0 }
  0x16   :  { %v139_v24 = vunpack.c.l.bf16 %v137_v21 }
  0x8e   :  { %v82_v9 = vpop.f32.mrf.mxu0 }
  0x8f   :  { %v86_v10 = vpack.c.bf16 %v82_v9, %v82_v9 }
  0x91   :  { %v92_v12 = vunpack.c.l.bf16 %v86_v10 }
  0x93   :  { %v94_v13 = vadd.f32 %v93_v11, %v92_v12 }
  0x95   :  { %v97_v14 = vmax.f32 %v94_v13, 0.0 }
  0x96   :  { %v84_v15 = vpop.f32.mrf.mxu0 }
  0x97   :  { %v98_v16 = vpack.c.bf16 %v97_v14, %v97_v14 }
  0x99   :  { %202 = vmatmul.msk.bf16.vlgmr.msra.gmra.mxu1 %vm115_vm1, %v98_v16 }
 0x116   :  { %v128_v22 = vpop.f32.mrf.mxu1 }
 0x117   :  { %v132_v23 = vpack.c.bf16 %v128_v22, %v128_v22 }
 0x119   :  { %v138_v25 = vunpack.c.l.bf16 %v132_v23 }
 0x11b   :  { %v140_v26 = vadd.f32 %v139_v24, %v138_v25 }
 0x11d   :  { %v143_v27 = vmax.f32 %v140_v26, 0.0 }
 0x11e   :  { %v130_v28 = vpop.f32.mrf.mxu1 }
 0x11f   :  { %v144_v29 = vpack.c.bf16 %v143_v27, %v143_v27 }
 0x121   :  { %211 = vmatmul.msk.bf16.vlgmr.msra.gmra.mxu2 %vm115_vm1, %v144_v29 }
 0x1a4   :  { %v177_v31 = vpop.f32.mrf.mxu2 }
 0x1a5   :  { %v178_v32 = vadd.f32 %v221_v30, %v177_v31 }
 0x1a7   :  { %182 = vst.msk [vmem:[%s357_s7] sm:$0xff] %vm181_vm2, %v178_v32 }
 0x1ac   :  { %v179_v33 = vpop.f32.mrf.mxu2 }
 0x1ad   :  { %187 = vsyncpa [#allocation4], 1 }
 0x1ae   :  { %188 = vsyncpa [#allocation6], 1 }

// kernel: tpu_custom_call.1
= control target key start
LH: loop header
LB: loop body
LE: loop exit
PB: predicated region body
PF: predicated region fallthrough
CT: control target
= control target key end

     0   :  { %s350_s0 = inlined_call_operand.hbm [shape: f32[8,16], index: 0, kind: input, shape index: {}]   ;;  %s351_s1 = inlined_call_operand.hbm [shape: bf16[16,32], index: 1, kind: input, shape index: {}]   ;;  %s352_s2 = inlined_call_operand.vmem [shape: bf16[1,32], index: 2, kind: input, shape index: {}]   ;;  %s353_s3 = inlined_call_operand.vmem [shape: bf16[32,32], index: 3, kind: input, shape index: {}]   ;;  %s354_s4 = inlined_call_operand.vmem [shape: bf16[1,32], index: 4, kind: input, shape index: {}]   ;;  %s355_s5 = inlined_call_operand.vmem [shape: bf16[32,1], index: 5, kind: input, shape index: {}]   ;;  %s356_s6 = inlined_call_operand.<no memory space> [shape: f32[1,1], index: 6, kind: input, shape index: {}]   ;;  %s357_s7 = inlined_call_operand.vmem [shape: f32[8,1], index: 7, kind: output, shape index: {}]  }
   0x1   :  { %v12_v0 = vstv %s356_s6 }
   0x2   :  { %13 = vst [vmem:[#allocation2] sm:$0x1] %v12_v0 }
   0x3   :  { %14 = vsyncpa [#allocation4], 0  ;;  %s21_s28 = sshll.u32 %s350_s0, 4  ;;  %s22_s28 = int_to_ptr.hbm [resolvable:$true] %s21_s28 }
   0x4   :  { %15 = vsyncpa [#allocation6], 0  ;;  %s274_s29 = smov [#allocation3]   ;;  %s31_s10 = sshll.u32 %s351_s1, 4  ;;  %s32_s10 = int_to_ptr.hbm [resolvable:$true] %s31_s10 }
   0x5   :  { %s23_s30 = sshll.u32 %s274_s29, 4  ;;  %s275_s11 = smov [#allocation5]   ;;  %s24_s30 = int_to_ptr.vmem [resolvable:$true] %s23_s30 }
   0x6   :  { %26 = dma.hbm_to_vmem [thread:$0]  %s22_s28, 128, %s24_s30, [#allocation4]  }
   0x7   :  { %s33_s12 = sshll.u32 %s275_s11, 4  ;;  %s276_s6 = smov 64   ;;  %s34_s12 = int_to_ptr.vmem [resolvable:$true] %s33_s12 }
   0x8   :  { %s277_s13 = smov 4  }
   0x9   :  { %39 = dma.hbm_to_vmem [thread:$0]  %s32_s10, 128, %s34_s12, [#allocation6], %s276_s6, %s276_s6, %s277_s13  }
   0xa   :  { %270 = dma.done.wait [#allocation4], 128  }
   0xb   :  { %271 = vsyncadd [#allocation4], 4294967168 }
   0xc   :  { %272 = dma.done.wait [#allocation6], 128  }
   0xd   :  { %273 = vsyncadd [#allocation6], 4294967168  ;;  %v212_v1 = vld [vmem:[#allocation5] sm:$0xff]  ;;  %v59_v2 = vld [vmem:[#allocation3] sm:$0xff]  ;;  %vm69_vm0 = vcmask 130048   ;;  %vm115_vm1 = vcmask 261120  }
   0xe   :  { %v60_v3 = vpack.c.bf16 %v59_v2, %v59_v2  ;;  %80 = vmatpush.bf16.msra.mxu0 %v212_v1  ;;  %v214_v4 = vld [vmem:[%s353_s3 + $0x8] sm:$0xff]  ;;  %v213_v5 = vld [vmem:[%s353_s3] sm:$0xff]  ;;  %vm181_vm2 = vcmask 7168  }
   0xf   :  { %125 = vmatpush.bf16.msra.mxu1 %v214_v4  ;;  %v87_v6 = vld [vmem:[%s352_s2] sm:$0x1]  ;;  %v216_v17 = vld [vmem:[%s355_s5 + $0x8] sm:$0xff] }
  0x10   :  { %v89_v7 = vpack.i.b16 %v87_v6, %v87_v6  ;;  %174 = vmatpush.bf16.msra.mxu2 %v216_v17  ;;  %v215_v18 = vld [vmem:[%s355_s5] sm:$0xff] }
  0x11   :  { %193 = vmatmul.msk.bf16.vlgmr.msra.gmra.mxu0 %vm69_vm0, %v60_v3  ;;  %v133_v19 = vld [vmem:[%s354_s4] sm:$0x1] }
  0x12   :  { %v91_v8 = vperm.slane %v89_v7, 0  ;;  %v135_v20 = vpack.i.b16 %v133_v19, %v133_v19  ;;  %v221_v30 = vld [vmem:[#allocation2] ss:$0 sm:$0xff] }
  0x13   :  { %126 = vmatpush.bf16.msra.mxu1 %v213_v5 }
  0x14   :  { %v93_v11 = vunpack.c.l.bf16 %v91_v8  ;;  %175 = vmatpush.bf16.msra.mxu2 %v215_v18  ;;  %v137_v21 = vperm.slane %v135_v20, 0 }
  0x16   :  { %v139_v24 = vunpack.c.l.bf16 %v137_v21 }
  0x8e   :  { %v82_v9 = vpop.f32.mrf.mxu0 }
  0x8f   :  { %v86_v10 = vpack.c.bf16 %v82_v9, %v82_v9 }
  0x91   :  { %v92_v12 = vunpack.c.l.bf16 %v86_v10 }
  0x93   :  { %v94_v13 = vadd.f32 %v93_v11, %v92_v12 }
  0x95   :  { %v97_v14 = vmax.f32 %v94_v13, 0.0 }
  0x96   :  { %v84_v15 = vpop.f32.mrf.mxu0 }
  0x97   :  { %v98_v16 = vpack.c.bf16 %v97_v14, %v97_v14 }
  0x99   :  { %202 = vmatmul.msk.bf16.vlgmr.msra.gmra.mxu1 %vm115_vm1, %v98_v16 }
 0x116   :  { %v128_v22 = vpop.f32.mrf.mxu1 }
 0x117   :  { %v132_v23 = vpack.c.bf16 %v128_v22, %v128_v22 }
 0x119   :  { %v138_v25 = vunpack.c.l.bf16 %v132_v23 }
 0x11b   :  { %v140_v26 = vadd.f32 %v139_v24, %v138_v25 }
 0x11d   :  { %v143_v27 = vmax.f32 %v140_v26, 0.0 }
 0x11e   :  { %v130_v28 = vpop.f32.mrf.mxu1 }
 0x11f   :  { %v144_v29 = vpack.c.bf16 %v143_v27, %v143_v27 }
 0x121   :  { %211 = vmatmul.msk.bf16.vlgmr.msra.gmra.mxu2 %vm115_vm1, %v144_v29 }
 0x1a4   :  { %v177_v31 = vpop.f32.mrf.mxu2 }
 0x1a5   :  { %v178_v32 = vadd.f32 %v221_v30, %v177_v31 }
 0x1a7   :  { %182 = vst.msk [vmem:[%s357_s7] sm:$0xff] %vm181_vm2, %v178_v32 }
 0x1ac   :  { %v179_v33 = vpop.f32.mrf.mxu2 }
 0x1ad   :  { %187 = vsyncpa [#allocation4], 1 }
 0x1ae   :  { %188 = vsyncpa [#allocation6], 1 }

</bundles_post_ra>
